<compile_context>
chip_gen: v7x
topology: tpu7x:2x2x1
jax: 0.10.0
libtpu: 0.0.40
codegen_flags: <defaults>
</compile_context>

<pallas_src>
import functools
import math

import jax
import jax.numpy as jnp
from jax import lax
from jax.experimental import pallas as pl
from jax.experimental.pallas import tpu as pltpu

_LANE = 128     # time axis padded to a multiple of the lane width
_SUBLANE = 8    # channel axes padded to a multiple of the sublane width


def _round_up(x, m):
    return (x + m - 1) // m * m


# --------------------------------------------------------------------------
# In-kernel compute (pure functions on values; all static shapes)
# --------------------------------------------------------------------------
def _shift_right_causal(x, s, Tp, masks):
    """x: (C, N) with N = bblk*Tp (batch segments concatenated along lanes).
    y[:, t] = x[:, t - s] within each Tp-lane batch segment; zeros where
    (t mod Tp) < s.  The mod-Tp mask simultaneously implements the causal
    zero padding and prevents the lane rotate from leaking batch b-1's tail
    into batch b's head."""
    if s == 0:
        return x
    if s >= Tp:
        return jnp.zeros_like(x)
    rolled = pltpu.roll(x, shift=s, axis=1)            # XLU lane rotation
    return jnp.where(masks[s], rolled, 0.0)


def _causal_conv(x, w_flat, bias, *, K, dilation, Tp, masks):
    """Dilated causal Conv1d over a (Cin_p, N) f32 slab.

    w_flat: (Cout_p, K*Cin_p) bf16 with column k*Cin_p + c holding w[o, c, k];
    bias: (Cout_p, 1) f32.  Returns (Cout_p, N) f32.
    y[o, t] = bias[o] + sum_{k,c} w[o, c, k] * x[c, t - (K-1-k)*dilation]
    """
    cin_p = x.shape[0]
    taps = [_shift_right_causal(x, (K - 1 - k) * dilation, Tp, masks)
            for k in range(K)]
    if K == 1 or K * cin_p < 128:
        # im2col: one MXU matmul with contraction dim K*Cin_p.
        xcol = taps[0] if K == 1 else jnp.concatenate(taps, axis=0)
        y = jnp.dot(w_flat, xcol.astype(jnp.bfloat16),
                    preferred_element_type=jnp.float32)
    else:
        # Contraction already >= 128: accumulate K dots and skip the
        # sublane-concat copy traffic (matters most on v5e's single vst slot).
        y = None
        for k in range(K):
            wk = w_flat[:, k * cin_p:(k + 1) * cin_p]
            yk = jnp.dot(wk, taps[k].astype(jnp.bfloat16),
                         preferred_element_type=jnp.float32)
            y = yk if y is None else y + yk
    return y + bias


def _temporal_block(x, w1, b1, w2, b2, wd, bd, *, K, dilation, Tp, masks):
    """conv1+ReLU -> conv2+ReLU -> (+ residual / 1x1 downsample) -> ReLU.
    Dropout is identity (eval mode).  Elementwise math stays f32 (VPU)."""
    h = jnp.maximum(_causal_conv(x, w1, b1, K=K, dilation=dilation,
                                 Tp=Tp, masks=masks), 0.0)
    h = jnp.maximum(_causal_conv(h, w2, b2, K=K, dilation=dilation,
                                 Tp=Tp, masks=masks), 0.0)
    if wd is None:
        res = x
    else:
        res = jnp.dot(wd, x.astype(jnp.bfloat16),
                      preferred_element_type=jnp.float32) + bd
    return jnp.maximum(h + res, 0.0)


def _tcn_kernel(*refs, layer_meta, K, Tp):
    """refs = (x_ref, *weight_refs, o_ref).  One grid step processes one
    (C, bblk*Tp) slab (bblk batch elements folded into the matmul N dim)
    through ALL TemporalBlocks (layer_meta is static)."""
    x_ref, o_ref = refs[0], refs[-1]
    w_refs = refs[1:-1]

    n_lanes = x_ref.shape[-1]
    # Hoisted ONCE per grid step: lane index modulo the per-batch segment
    # length and one mask per distinct causal shift (JAX never CSEs
    # broadcast_in_dim, so these must not be rebuilt per tap/layer).
    t_mod = lax.broadcasted_iota(jnp.int32, (1, n_lanes), 1) % Tp
    shifts = sorted({(K - 1 - k) * d for d, _ in layer_meta for k in range(K)})
    masks = {s: t_mod >= s for s in shifts if 0 < s < Tp}

    h = x_ref[...]                                     # (C0_p, bblk*Tp) f32
    idx = 0
    for dilation, has_down in layer_meta:
        # Load this layer's weights right before use (bounded live ranges).
        w1, b1 = w_refs[idx][...], w_refs[idx + 1][...]
        w2, b2 = w_refs[idx + 2][...], w_refs[idx + 3][...]
        idx += 4
        wd = bd = None
        if has_down:
            wd, bd = w_refs[idx][...], w_refs[idx + 1][...]
            idx += 2
        h = _temporal_block(h, w1, b1, w2, b2, wd, bd,
                            K=K, dilation=dilation, Tp=Tp, masks=masks)
    o_ref[...] = h.astype(o_ref.dtype)


# --------------------------------------------------------------------------
# pallas_call wrapper
# --------------------------------------------------------------------------
def temporal_conv_net_pallas(x_bct, params, *, kernel_size=3, batch_block=None):
    """x_bct: [B, C_in, T] (PyTorch NCT layout) -> [B, C_out, T]."""
    B, C0, T = x_bct.shape
    K = kernel_size
    c_last = params[-1]["cout"]
    c_last_p = _round_up(c_last, _SUBLANE)
    C0p = _round_up(C0, _SUBLANE)
    Tp = _round_up(T, _LANE)

    # ---- generation-aware batch-block sizing -------------------------------
    # Rough f32 working set per batch element: double-buffered in/out blocks
    # + activations + im2col slab.  Budgeted at 40 MiB so the whole step
    # (plus weights) fits v7x's 64 MiB physical VMEM; v5e/v6e (128 MiB) just
    # get more headroom.  Also keep >= 2 grid steps so the BlockSpec pipeline
    # can overlap DMA with compute and both v7x TensorCores get work.
    cps = [C0p] + [_round_up(p["cout"], _SUBLANE) for p in params]
    cmax = max(cps)
    per_batch_bytes = (2 * (C0p + c_last_p) + (K + 3) * cmax) * Tp * 4
    if batch_block is not None:
        bblk = int(batch_block)
    else:
        cap_vmem = max(1, (40 << 20) // per_batch_bytes)
        cap_grid = max(1, B // 2) if B > 1 else 1
        bblk = int(max(1, min(B, 8, cap_vmem, cap_grid)))
    Bp = _round_up(B, bblk)

    # ---- layout plumbing: fold batch into the lane/time axis --------------
    # [B, C, T] -> zero-pad -> [C0p, Bp*Tp]; each batch element occupies one
    # Tp-lane segment.  Padded channels/time are zero and never read by valid
    # (causal) outputs; padded rows stay zero through every layer.
    x = jnp.pad(x_bct, ((0, Bp - B), (0, C0p - C0), (0, Tp - T)))
    x2d = jnp.transpose(x, (1, 0, 2)).reshape(C0p, Bp * Tp)

    w_args, in_specs, layer_meta = [], [], []
    in_specs.append(pl.BlockSpec((C0p, bblk * Tp), lambda i: (0, i)))

    def _add(a):   # grid-invariant weights: VMEM-resident, single-buffered
        w_args.append(a)
        in_specs.append(pl.BlockSpec(a.shape, lambda i: (0, 0),
                                     pipeline_mode=pl.Buffered(1)))

    for p in params:
        _add(p["w1f"]); _add(p["b1k"]); _add(p["w2f"]); _add(p["b2k"])
        if p["has_down"]:
            _add(p["wdf"]); _add(p["bdk"])
        layer_meta.append((p["dilation"], p["has_down"]))

    kernel = functools.partial(_tcn_kernel, layer_meta=tuple(layer_meta),
                               K=K, Tp=Tp)

    # Scoped-VMEM limit derived from the physical capacity:
    # v7x (64 MiB) -> 48 MiB, v5e/v6e (128 MiB) -> 112 MiB.
    try:
        phys = pltpu.get_tpu_info().vmem_capacity_bytes
    except Exception:
        phys = 64 << 20          # conservative fallback (v7x-sized)
    vmem_limit = int(max(32 << 20, min(phys - (16 << 20), 112 << 20)))

    out2d = pl.pallas_call(
        kernel,
        out_shape=jax.ShapeDtypeStruct((c_last_p, Bp * Tp), x_bct.dtype),
        grid_spec=pltpu.PrefetchScalarGridSpec(
            num_scalar_prefetch=0,
            grid=(Bp // bblk,),
            in_specs=in_specs,
            out_specs=pl.BlockSpec((c_last_p, bblk * Tp), lambda i: (0, i)),
        ),
        compiler_params=pltpu.CompilerParams(
            dimension_semantics=("parallel",),   # lane-chunks are independent
            vmem_limit_bytes=vmem_limit,
        ),
    )(x2d, *w_args)

    out = out2d.reshape(c_last_p, Bp, Tp).transpose(1, 0, 2)
    return out[:B, :c_last, :T]


# --------------------------------------------------------------------------
# Parameter construction (PyTorch-shaped, weight_norm folded) + kernel layout
# --------------------------------------------------------------------------
def _conv_init(key, cout, cin, k):
    bound = 1.0 / math.sqrt(cin * k)
    kw, kb = jax.random.split(key)
    w = jax.random.uniform(kw, (cout, cin, k), jnp.float32, -bound, bound)
    b = jax.random.uniform(kb, (cout,), jnp.float32, -bound, bound)
    return w, b


def _weight_norm(v, g):
    # nn.utils.weight_norm default dim=0: w = g * v / ||v|| over dims (1, 2)
    norm = jnp.sqrt(jnp.sum(v * v, axis=(1, 2), keepdims=True))
    return g * v / norm


def _to_kernel_layout(w_t, b, K):
    """torch [Cout, Cin, K] conv weight -> padded flat bf16 (Cout_p, K*Cin_p)
    (column k*Cin_p + c holds w[o, c, k]); bias -> f32 (Cout_p, 1)."""
    cout, cin, _ = w_t.shape
    cout_p, cin_p = _round_up(cout, _SUBLANE), _round_up(cin, _SUBLANE)
    w = jnp.pad(w_t, ((0, cout_p - cout), (0, cin_p - cin), (0, 0)))
    w_flat = jnp.transpose(w, (0, 2, 1)).reshape(cout_p, K * cin_p)
    w_flat = w_flat.astype(jnp.bfloat16)          # single-pass MXU operands
    b_p = jnp.pad(b, (0, cout_p - cout))[:, None].astype(jnp.float32)
    return w_flat, b_p


def make_tcn_params(key, num_inputs, num_channels, kernel_size=3):
    params = []
    for i, out_ch in enumerate(num_channels):
        in_ch = num_inputs if i == 0 else num_channels[i - 1]
        dilation = 2 ** i
        key, k1, k2, k3 = jax.random.split(key, 4)

        v1, b1 = _conv_init(k1, out_ch, in_ch, kernel_size)
        g1 = jnp.sqrt(jnp.sum(v1 * v1, axis=(1, 2), keepdims=True))  # g=||v||
        w1_t = _weight_norm(v1, g1)
        v2, b2 = _conv_init(k2, out_ch, out_ch, kernel_size)
        g2 = jnp.sqrt(jnp.sum(v2 * v2, axis=(1, 2), keepdims=True))
        w2_t = _weight_norm(v2, g2)

        has_down = in_ch != out_ch
        wd_t, bd = (_conv_init(k3, out_ch, in_ch, 1) if has_down
                    else (None, None))

        w1f, b1k = _to_kernel_layout(w1_t, b1, kernel_size)
        w2f, b2k = _to_kernel_layout(w2_t, b2, kernel_size)
        wdf, bdk = (_to_kernel_layout(wd_t, bd, 1) if has_down else (None, None))

        params.append(dict(
            dilation=dilation, has_down=has_down, cout=out_ch,
            # torch layout (for the pure-JAX reference)
            w1_t=w1_t, b1=b1, w2_t=w2_t, b2=b2, wd_t=wd_t, bd=bd,
            # padded, flattened, bf16 kernel layout
            w1f=w1f, b1k=b1k, w2f=w2f, b2k=b2k, wdf=wdf, bdk=bdk,
        ))
    return params


# --------------------------------------------------------------------------
# Pure-JAX reference (eval mode: dropout = identity), high precision
# --------------------------------------------------------------------------
def _causal_conv_ref(x, w, b, dilation):
    K = w.shape[2]
    pad = (K - 1) * dilation
    dn = lax.conv_dimension_numbers(x.shape, w.shape, ("NCH", "OIH", "NCH"))
    y = lax.conv_general_dilated(x, w, window_strides=(1,),
                                 padding=[(pad, pad)], rhs_dilation=(dilation,),
                                 dimension_numbers=dn,
                                 precision=lax.Precision.HIGHEST)
    return y[:, :, :x.shape[2]] + b[None, :, None]


def temporal_conv_net_ref(x, params):
    h = x
    for p in params:
        out = jnp.maximum(_causal_conv_ref(h, p["w1_t"], p["b1"], p["dilation"]), 0.0)
        out = jnp.maximum(_causal_conv_ref(out, p["w2_t"], p["b2"], p["dilation"]), 0.0)
        if p["has_down"]:
            dn = lax.conv_dimension_numbers(h.shape, p["wd_t"].shape,
                                            ("NCH", "OIH", "NCH"))
            res = lax.conv_general_dilated(h, p["wd_t"], (1,), [(0, 0)],
                                           dimension_numbers=dn,
                                           precision=lax.Precision.HIGHEST)
            res = res + p["bd"][None, :, None]
        else:
            res = h
        h = jnp.maximum(out + res, 0.0)
    return h


# --------------------------------------------------------------------------
if __name__ == "__main__":
    key = jax.random.PRNGKey(0)
    B, D, T = 2, 4, 16
    num_channels = [8, 8]          # two TemporalBlocks, dilations 1 and 2
    kernel_size = 3

    kx, kp = jax.random.split(key)
    x = jax.random.normal(kx, (B, D, T), jnp.float32)   # [B, D, T] torch layout
    params = make_tcn_params(kp, D, num_channels, kernel_size)

    out = jax.block_until_ready(
        temporal_conv_net_pallas(x, params, kernel_size=kernel_size))
    ref = jax.block_until_ready(temporal_conv_net_ref(x, params))

    assert out.shape == (B, num_channels[-1], T), out.shape
    # Kernel matmuls are single-pass bf16 (f32 accumulate); the reference runs
    # at HIGHEST precision, so tolerance is loosened accordingly.
    max_err = float(jnp.max(jnp.abs(out - ref)))
    assert jnp.allclose(out, ref, atol=5e-2, rtol=5e-2), max_err
    print("KERNEL_OK")
</pallas_src>

<mosaic_0001>
module attributes {stable_mosaic.version = 11 : i64} {
  func.func @_tcn_kernel(%arg0: i32, %arg1: memref<8x128xf32, #tpu.memory_space<vmem>>, %arg2: memref<8x24xbf16, #tpu.memory_space<vmem>>, %arg3: memref<8x1xf32, #tpu.memory_space<vmem>>, %arg4: memref<8x24xbf16, #tpu.memory_space<vmem>>, %arg5: memref<8x1xf32, #tpu.memory_space<vmem>>, %arg6: memref<8x8xbf16, #tpu.memory_space<vmem>>, %arg7: memref<8x1xf32, #tpu.memory_space<vmem>>, %arg8: memref<8x24xbf16, #tpu.memory_space<vmem>>, %arg9: memref<8x1xf32, #tpu.memory_space<vmem>>, %arg10: memref<8x24xbf16, #tpu.memory_space<vmem>>, %arg11: memref<8x1xf32, #tpu.memory_space<vmem>>, %arg12: memref<8x128xf32, #tpu.memory_space<vmem>>) attributes {dimension_semantics = [#tpu.dimension_semantics<parallel>], iteration_bounds = array<i64: 2>, scalar_prefetch = 0 : i64, scratch_operands = 0 : i64, tpu.core_type = #tpu.core_type<tc>, window_params = [{transform_indices = @transform_0, window_bounds = array<i64: 8, 128>}, {pipeline_mode = #tpu.pipeline_mode<synchronous>, transform_indices = @transform_1, window_bounds = array<i64: 8, 24>}, {pipeline_mode = #tpu.pipeline_mode<synchronous>, transform_indices = @transform_2, window_bounds = array<i64: 8, 1>}, {pipeline_mode = #tpu.pipeline_mode<synchronous>, transform_indices = @transform_3, window_bounds = array<i64: 8, 24>}, {pipeline_mode = #tpu.pipeline_mode<synchronous>, transform_indices = @transform_4, window_bounds = array<i64: 8, 1>}, {pipeline_mode = #tpu.pipeline_mode<synchronous>, transform_indices = @transform_5, window_bounds = array<i64: 8, 8>}, {pipeline_mode = #tpu.pipeline_mode<synchronous>, transform_indices = @transform_6, window_bounds = array<i64: 8, 1>}, {pipeline_mode = #tpu.pipeline_mode<synchronous>, transform_indices = @transform_7, window_bounds = array<i64: 8, 24>}, {pipeline_mode = #tpu.pipeline_mode<synchronous>, transform_indices = @transform_8, window_bounds = array<i64: 8, 1>}, {pipeline_mode = #tpu.pipeline_mode<synchronous>, transform_indices = @transform_9, window_bounds = array<i64: 8, 24>}, {pipeline_mode = #tpu.pipeline_mode<synchronous>, transform_indices = @transform_10, window_bounds = array<i64: 8, 1>}, {transform_indices = @transform_11, window_bounds = array<i64: 8, 128>}]} {
    %0 = tpu.iota {dimensions = array<i32: 1>} : vector<1x128xi32>
    %c128_i32 = arith.constant 128 : i32
    %c0_i32 = arith.constant 0 : i32
    %1 = arith.cmpi eq, %c128_i32, %c0_i32 : i32
    %c1_i32 = arith.constant 1 : i32
    %2 = arith.select %1, %c1_i32, %c128_i32 : i32
    %3 = vector.broadcast %2 : i32 to vector<1x128xi32>
    %4 = arith.remsi %0, %3 : vector<1x128xi32>
    %c0_i32_0 = arith.constant 0 : i32
    %5 = vector.broadcast %c0_i32_0 : i32 to vector<1x128xi32>
    %6 = arith.cmpi ne, %4, %5 : vector<1x128xi32>
    %c0_i32_1 = arith.constant 0 : i32
    %7 = vector.broadcast %c0_i32_1 : i32 to vector<1x128xi32>
    %8 = arith.cmpi slt, %4, %7 : vector<1x128xi32>
    %c0_i32_2 = arith.constant 0 : i32
    %9 = arith.cmpi slt, %2, %c0_i32_2 : i32
    %10 = vector.broadcast %9 : i1 to vector<1x128xi1>
    %11 = vector.broadcast %10 : vector<1x128xi1> to vector<1x128xi1>
    %12 = arith.xori %8, %11 : vector<1x128xi1>
    %13 = arith.andi %12, %6 : vector<1x128xi1>
    %14 = vector.broadcast %2 : i32 to vector<1x128xi32>
    %15 = arith.addi %4, %14 : vector<1x128xi32>
    %16 = arith.select %13, %15, %4 : vector<1x128xi1>, vector<1x128xi32>
    %c1_i32_3 = arith.constant 1 : i32
    %17 = vector.broadcast %c1_i32_3 : i32 to vector<1x128xi32>
    %18 = arith.cmpi sge, %16, %17 : vector<1x128xi32>
    %c2_i32 = arith.constant 2 : i32
    %19 = vector.broadcast %c2_i32 : i32 to vector<1x128xi32>
    %20 = arith.cmpi sge, %16, %19 : vector<1x128xi32>
    %c4_i32 = arith.constant 4 : i32
    %21 = vector.broadcast %c4_i32 : i32 to vector<1x128xi32>
    %22 = arith.cmpi sge, %16, %21 : vector<1x128xi32>
    %c0 = arith.constant 0 : index
    %c0_4 = arith.constant 0 : index
    %23 = vector.load %arg1[%c0, %c0_4] : memref<8x128xf32, #tpu.memory_space<vmem>>, vector<8x128xf32>
    %c0_5 = arith.constant 0 : index
    %c0_6 = arith.constant 0 : index
    %24 = vector.load %arg2[%c0_5, %c0_6] : memref<8x24xbf16, #tpu.memory_space<vmem>>, vector<8x24xbf16>
    %c0_7 = arith.constant 0 : index
    %c0_8 = arith.constant 0 : index
    %25 = vector.load %arg3[%c0_7, %c0_8] : memref<8x1xf32, #tpu.memory_space<vmem>>, vector<8x1xf32>
    %c0_9 = arith.constant 0 : index
    %c0_10 = arith.constant 0 : index
    %26 = vector.load %arg4[%c0_9, %c0_10] : memref<8x24xbf16, #tpu.memory_space<vmem>>, vector<8x24xbf16>
    %c0_11 = arith.constant 0 : index
    %c0_12 = arith.constant 0 : index
    %27 = vector.load %arg5[%c0_11, %c0_12] : memref<8x1xf32, #tpu.memory_space<vmem>>, vector<8x1xf32>
    %c0_13 = arith.constant 0 : index
    %c0_14 = arith.constant 0 : index
    %28 = vector.load %arg6[%c0_13, %c0_14] : memref<8x8xbf16, #tpu.memory_space<vmem>>, vector<8x8xbf16>
    %c0_15 = arith.constant 0 : index
    %c0_16 = arith.constant 0 : index
    %29 = vector.load %arg7[%c0_15, %c0_16] : memref<8x1xf32, #tpu.memory_space<vmem>>, vector<8x1xf32>
    %c2_i32_17 = arith.constant 2 : i32
    %30 = tpu.dynamic_rotate %23 by %c2_i32_17 dim 1 : vector<8x128xf32>, i32 -> vector<8x128xf32>
    %cst = arith.constant 0.000000e+00 : f32
    %31 = vector.shape_cast %20 : vector<1x128xi1> to vector<1x128xi1>
    %32 = vector.broadcast %31 : vector<1x128xi1> to vector<8x128xi1>
    %33 = vector.broadcast %cst : f32 to vector<8x128xf32>
    %34 = arith.select %32, %30, %33 : vector<8x128xi1>, vector<8x128xf32>
    %c1_i32_18 = arith.constant 1 : i32
    %35 = tpu.dynamic_rotate %23 by %c1_i32_18 dim 1 : vector<8x128xf32>, i32 -> vector<8x128xf32>
    %cst_19 = arith.constant 0.000000e+00 : f32
    %36 = vector.shape_cast %18 : vector<1x128xi1> to vector<1x128xi1>
    %37 = vector.broadcast %36 : vector<1x128xi1> to vector<8x128xi1>
    %38 = vector.broadcast %cst_19 : f32 to vector<8x128xf32>
    %39 = arith.select %37, %35, %38 : vector<8x128xi1>, vector<8x128xf32>
    %40 = tpu.concatenate %34, %39, %23 in 0 : vector<8x128xf32>, vector<8x128xf32>, vector<8x128xf32> -> vector<24x128xf32>
    %41 = arith.truncf %40 : vector<24x128xf32> to vector<24x128xbf16>
    %cst_20 = arith.constant dense<0.000000e+00> : vector<8x128xf32>
    %42 = tpu.matmul %24, %41, %cst_20 {dimension_numbers = #tpu.dot_dimension_numbers<[1], [0], [0], [1], [0, 0, 1, 1], [], []>} : vector<8x24xbf16>, vector<24x128xbf16>, vector<8x128xf32> -> vector<8x128xf32>
    %43 = vector.broadcast %25 : vector<8x1xf32> to vector<8x128xf32>
    %44 = arith.addf %42, %43 : vector<8x128xf32>
    %cst_21 = arith.constant 0.000000e+00 : f32
    %45 = vector.broadcast %cst_21 : f32 to vector<8x128xf32>
    %46 = arith.maximumf %44, %45 : vector<8x128xf32>
    %c2_i32_22 = arith.constant 2 : i32
    %47 = tpu.dynamic_rotate %46 by %c2_i32_22 dim 1 : vector<8x128xf32>, i32 -> vector<8x128xf32>
    %cst_23 = arith.constant 0.000000e+00 : f32
    %48 = vector.shape_cast %20 : vector<1x128xi1> to vector<1x128xi1>
    %49 = vector.broadcast %48 : vector<1x128xi1> to vector<8x128xi1>
    %50 = vector.broadcast %cst_23 : f32 to vector<8x128xf32>
    %51 = arith.select %49, %47, %50 : vector<8x128xi1>, vector<8x128xf32>
    %c1_i32_24 = arith.constant 1 : i32
    %52 = tpu.dynamic_rotate %46 by %c1_i32_24 dim 1 : vector<8x128xf32>, i32 -> vector<8x128xf32>
    %cst_25 = arith.constant 0.000000e+00 : f32
    %53 = vector.shape_cast %18 : vector<1x128xi1> to vector<1x128xi1>
    %54 = vector.broadcast %53 : vector<1x128xi1> to vector<8x128xi1>
    %55 = vector.broadcast %cst_25 : f32 to vector<8x128xf32>
    %56 = arith.select %54, %52, %55 : vector<8x128xi1>, vector<8x128xf32>
    %57 = tpu.concatenate %51, %56, %46 in 0 : vector<8x128xf32>, vector<8x128xf32>, vector<8x128xf32> -> vector<24x128xf32>
    %58 = arith.truncf %57 : vector<24x128xf32> to vector<24x128xbf16>
    %cst_26 = arith.constant dense<0.000000e+00> : vector<8x128xf32>
    %59 = tpu.matmul %26, %58, %cst_26 {dimension_numbers = #tpu.dot_dimension_numbers<[1], [0], [0], [1], [0, 0, 1, 1], [], []>} : vector<8x24xbf16>, vector<24x128xbf16>, vector<8x128xf32> -> vector<8x128xf32>
    %60 = vector.broadcast %27 : vector<8x1xf32> to vector<8x128xf32>
    %61 = arith.addf %59, %60 : vector<8x128xf32>
    %cst_27 = arith.constant 0.000000e+00 : f32
    %62 = vector.broadcast %cst_27 : f32 to vector<8x128xf32>
    %63 = arith.maximumf %61, %62 : vector<8x128xf32>
    %64 = arith.truncf %23 : vector<8x128xf32> to vector<8x128xbf16>
    %cst_28 = arith.constant dense<0.000000e+00> : vector<8x128xf32>
    %65 = tpu.matmul %28, %64, %cst_28 {dimension_numbers = #tpu.dot_dimension_numbers<[1], [0], [0], [1], [0, 0, 1, 1], [], []>} : vector<8x8xbf16>, vector<8x128xbf16>, vector<8x128xf32> -> vector<8x128xf32>
    %66 = vector.broadcast %29 : vector<8x1xf32> to vector<8x128xf32>
    %67 = arith.addf %65, %66 : vector<8x128xf32>
    %68 = arith.addf %63, %67 : vector<8x128xf32>
    %cst_29 = arith.constant 0.000000e+00 : f32
    %69 = vector.broadcast %cst_29 : f32 to vector<8x128xf32>
    %70 = arith.maximumf %68, %69 : vector<8x128xf32>
    %c0_30 = arith.constant 0 : index
    %c0_31 = arith.constant 0 : index
    %71 = vector.load %arg8[%c0_30, %c0_31] : memref<8x24xbf16, #tpu.memory_space<vmem>>, vector<8x24xbf16>
    %c0_32 = arith.constant 0 : index
    %c0_33 = arith.constant 0 : index
    %72 = vector.load %arg9[%c0_32, %c0_33] : memref<8x1xf32, #tpu.memory_space<vmem>>, vector<8x1xf32>
    %c0_34 = arith.constant 0 : index
    %c0_35 = arith.constant 0 : index
    %73 = vector.load %arg10[%c0_34, %c0_35] : memref<8x24xbf16, #tpu.memory_space<vmem>>, vector<8x24xbf16>
    %c0_36 = arith.constant 0 : index
    %c0_37 = arith.constant 0 : index
    %74 = vector.load %arg11[%c0_36, %c0_37] : memref<8x1xf32, #tpu.memory_space<vmem>>, vector<8x1xf32>
    %c4_i32_38 = arith.constant 4 : i32
    %75 = tpu.dynamic_rotate %70 by %c4_i32_38 dim 1 : vector<8x128xf32>, i32 -> vector<8x128xf32>
    %cst_39 = arith.constant 0.000000e+00 : f32
    %76 = vector.shape_cast %22 : vector<1x128xi1> to vector<1x128xi1>
    %77 = vector.broadcast %76 : vector<1x128xi1> to vector<8x128xi1>
    %78 = vector.broadcast %cst_39 : f32 to vector<8x128xf32>
    %79 = arith.select %77, %75, %78 : vector<8x128xi1>, vector<8x128xf32>
    %c2_i32_40 = arith.constant 2 : i32
    %80 = tpu.dynamic_rotate %70 by %c2_i32_40 dim 1 : vector<8x128xf32>, i32 -> vector<8x128xf32>
    %cst_41 = arith.constant 0.000000e+00 : f32
    %81 = vector.shape_cast %20 : vector<1x128xi1> to vector<1x128xi1>
    %82 = vector.broadcast %81 : vector<1x128xi1> to vector<8x128xi1>
    %83 = vector.broadcast %cst_41 : f32 to vector<8x128xf32>
    %84 = arith.select %82, %80, %83 : vector<8x128xi1>, vector<8x128xf32>
    %85 = tpu.concatenate %79, %84, %70 in 0 : vector<8x128xf32>, vector<8x128xf32>, vector<8x128xf32> -> vector<24x128xf32>
    %86 = arith.truncf %85 : vector<24x128xf32> to vector<24x128xbf16>
    %cst_42 = arith.constant dense<0.000000e+00> : vector<8x128xf32>
    %87 = tpu.matmul %71, %86, %cst_42 {dimension_numbers = #tpu.dot_dimension_numbers<[1], [0], [0], [1], [0, 0, 1, 1], [], []>} : vector<8x24xbf16>, vector<24x128xbf16>, vector<8x128xf32> -> vector<8x128xf32>
    %88 = vector.broadcast %72 : vector<8x1xf32> to vector<8x128xf32>
    %89 = arith.addf %87, %88 : vector<8x128xf32>
    %cst_43 = arith.constant 0.000000e+00 : f32
    %90 = vector.broadcast %cst_43 : f32 to vector<8x128xf32>
    %91 = arith.maximumf %89, %90 : vector<8x128xf32>
    %c4_i32_44 = arith.constant 4 : i32
    %92 = tpu.dynamic_rotate %91 by %c4_i32_44 dim 1 : vector<8x128xf32>, i32 -> vector<8x128xf32>
    %cst_45 = arith.constant 0.000000e+00 : f32
    %93 = vector.shape_cast %22 : vector<1x128xi1> to vector<1x128xi1>
    %94 = vector.broadcast %93 : vector<1x128xi1> to vector<8x128xi1>
    %95 = vector.broadcast %cst_45 : f32 to vector<8x128xf32>
    %96 = arith.select %94, %92, %95 : vector<8x128xi1>, vector<8x128xf32>
    %c2_i32_46 = arith.constant 2 : i32
    %97 = tpu.dynamic_rotate %91 by %c2_i32_46 dim 1 : vector<8x128xf32>, i32 -> vector<8x128xf32>
    %cst_47 = arith.constant 0.000000e+00 : f32
    %98 = vector.shape_cast %20 : vector<1x128xi1> to vector<1x128xi1>
    %99 = vector.broadcast %98 : vector<1x128xi1> to vector<8x128xi1>
    %100 = vector.broadcast %cst_47 : f32 to vector<8x128xf32>
    %101 = arith.select %99, %97, %100 : vector<8x128xi1>, vector<8x128xf32>
    %102 = tpu.concatenate %96, %101, %91 in 0 : vector<8x128xf32>, vector<8x128xf32>, vector<8x128xf32> -> vector<24x128xf32>
    %103 = arith.truncf %102 : vector<24x128xf32> to vector<24x128xbf16>
    %cst_48 = arith.constant dense<0.000000e+00> : vector<8x128xf32>
    %104 = tpu.matmul %73, %103, %cst_48 {dimension_numbers = #tpu.dot_dimension_numbers<[1], [0], [0], [1], [0, 0, 1, 1], [], []>} : vector<8x24xbf16>, vector<24x128xbf16>, vector<8x128xf32> -> vector<8x128xf32>
    %105 = vector.broadcast %74 : vector<8x1xf32> to vector<8x128xf32>
    %106 = arith.addf %104, %105 : vector<8x128xf32>
    %cst_49 = arith.constant 0.000000e+00 : f32
    %107 = vector.broadcast %cst_49 : f32 to vector<8x128xf32>
    %108 = arith.maximumf %106, %107 : vector<8x128xf32>
    %109 = arith.addf %108, %70 : vector<8x128xf32>
    %cst_50 = arith.constant 0.000000e+00 : f32
    %110 = vector.broadcast %cst_50 : f32 to vector<8x128xf32>
    %111 = arith.maximumf %109, %110 : vector<8x128xf32>
    %c0_51 = arith.constant 0 : index
    %c0_52 = arith.constant 0 : index
    %112 = vector.load %arg12[%c0_51, %c0_52] : memref<8x128xf32, #tpu.memory_space<vmem>>, vector<8x128xf32>
    tpu.vector_store %arg12[%c0_51, %c0_52], %111 {strides = array<i32>} : memref<8x128xf32, #tpu.memory_space<vmem>>, vector<8x128xf32>,
    return
  }
  func.func @transform_0(%arg0: i32) -> (i32, i32) {
    %c0_i32 = arith.constant 0 : i32
    %c0_i32_0 = arith.constant 0 : i32
    return %c0_i32, %arg0 : i32, i32
  }
  func.func @transform_1(%arg0: i32) -> (i32, i32) {
    %c0_i32 = arith.constant 0 : i32
    %c0_i32_0 = arith.constant 0 : i32
    %c0_i32_1 = arith.constant 0 : i32
    return %c0_i32, %c0_i32_0 : i32, i32
  }
  func.func @transform_2(%arg0: i32) -> (i32, i32) {
    %c0_i32 = arith.constant 0 : i32
    %c0_i32_0 = arith.constant 0 : i32
    %c0_i32_1 = arith.constant 0 : i32
    return %c0_i32, %c0_i32_0 : i32, i32
  }
  func.func @transform_3(%arg0: i32) -> (i32, i32) {
    %c0_i32 = arith.constant 0 : i32
    %c0_i32_0 = arith.constant 0 : i32
    %c0_i32_1 = arith.constant 0 : i32
    return %c0_i32, %c0_i32_0 : i32, i32
  }
  func.func @transform_4(%arg0: i32) -> (i32, i32) {
    %c0_i32 = arith.constant 0 : i32
    %c0_i32_0 = arith.constant 0 : i32
    %c0_i32_1 = arith.constant 0 : i32
    return %c0_i32, %c0_i32_0 : i32, i32
  }
  func.func @transform_5(%arg0: i32) -> (i32, i32) {
    %c0_i32 = arith.constant 0 : i32
    %c0_i32_0 = arith.constant 0 : i32
    %c0_i32_1 = arith.constant 0 : i32
    return %c0_i32, %c0_i32_0 : i32, i32
  }
  func.func @transform_6(%arg0: i32) -> (i32, i32) {
    %c0_i32 = arith.constant 0 : i32
    %c0_i32_0 = arith.constant 0 : i32
    %c0_i32_1 = arith.constant 0 : i32
    return %c0_i32, %c0_i32_0 : i32, i32
  }
  func.func @transform_7(%arg0: i32) -> (i32, i32) {
    %c0_i32 = arith.constant 0 : i32
    %c0_i32_0 = arith.constant 0 : i32
    %c0_i32_1 = arith.constant 0 : i32
    return %c0_i32, %c0_i32_0 : i32, i32
  }
  func.func @transform_8(%arg0: i32) -> (i32, i32) {
    %c0_i32 = arith.constant 0 : i32
    %c0_i32_0 = arith.constant 0 : i32
    %c0_i32_1 = arith.constant 0 : i32
    return %c0_i32, %c0_i32_0 : i32, i32
  }
  func.func @transform_9(%arg0: i32) -> (i32, i32) {
    %c0_i32 = arith.constant 0 : i32
    %c0_i32_0 = arith.constant 0 : i32
    %c0_i32_1 = arith.constant 0 : i32
    return %c0_i32, %c0_i32_0 : i32, i32
  }
  func.func @transform_10(%arg0: i32) -> (i32, i32) {
    %c0_i32 = arith.constant 0 : i32
    %c0_i32_0 = arith.constant 0 : i32
    %c0_i32_1 = arith.constant 0 : i32
    return %c0_i32, %c0_i32_0 : i32, i32
  }
  func.func @transform_11(%arg0: i32) -> (i32, i32) {
    %c0_i32 = arith.constant 0 : i32
    %c0_i32_0 = arith.constant 0 : i32
    return %c0_i32, %arg0 : i32, i32
  }
}

</mosaic_0001>

<bundles_post_ra>
// kernel: tpu_custom_call.1
= control target key start
LH: loop header
LB: loop body
LE: loop exit
PB: predicated region body
PF: predicated region fallthrough
CT: control target
= control target key end

     0   :  { %s1224_s0 = inlined_call_operand.vmem [shape: f32[8,256], index: 0, kind: input, shape index: {}]   ;;  %s1225_s1 = inlined_call_operand.vmem [shape: bf16[8,24], index: 1, kind: input, shape index: {}]   ;;  %s1226_s2 = inlined_call_operand.vmem [shape: f32[8,1], index: 2, kind: input, shape index: {}]   ;;  %s1227_s3 = inlined_call_operand.vmem [shape: bf16[8,24], index: 3, kind: input, shape index: {}]   ;;  %s1228_s4 = inlined_call_operand.vmem [shape: f32[8,1], index: 4, kind: input, shape index: {}]   ;;  %s1229_s5 = inlined_call_operand.vmem [shape: bf16[8,8], index: 5, kind: input, shape index: {}]   ;;  %s1230_s6 = inlined_call_operand.vmem [shape: f32[8,1], index: 6, kind: input, shape index: {}]   ;;  %s1231_s7 = inlined_call_operand.vmem [shape: bf16[8,24], index: 7, kind: input, shape index: {}]   ;;  %s1232_s8 = inlined_call_operand.vmem [shape: f32[8,1], index: 8, kind: input, shape index: {}]   ;;  %s1233_s9 = inlined_call_operand.vmem [shape: bf16[8,24], index: 9, kind: input, shape index: {}]   ;;  %s1234_s10 = inlined_call_operand.vmem [shape: f32[8,1], index: 10, kind: input, shape index: {}]   ;;  %s1235_s11 = inlined_call_operand.hbm [shape: f32[8,256], index: 11, kind: output, shape index: {}]  }
   0x1   :  { %1236 = sst [smem:[#allocation5_spill]] %s1224_s0 }
   0x2   :  { %16 = vsyncpa [#allocation3], 0 }
   0x3   :  { %18 = vsyncpa [#allocation3 + $0x1], 0  ;;  %s1043_s17 = smov 0   ;;  %s1045_s18 = smov 0  }
   0x4   :  { %s1047_s19 = smov 0   ;;  %s1049_s20 = smov 0  }
   0x5 LB: > { %s1064_s21 = sadd.s32 4294967295, %s974_s20   ;;  %s786_s22 = sadd.s32 4294967294, %s974_s20   ;;  %s974_s20 = sphi %s1049_s20, %s1247_s20   ;;  %s970_s19 = sphi %s1047_s19, %s1246_s19   ;;  %s966_s18 = sphi %s1045_s18, %s1245_s18   ;;  %s962_s17 = sphi %s1043_s17, %s1244_s17  }
   0x6   : > { %s1068_s23 = sadd.s32 1, %s974_s20   ;;  %s267_s24 = sadd.s32 1, %s970_s19 }
   0x7   : > { %s264_s25 = ssub.s32 %s974_s20, %s1068_s23  ;;  %p277_p0 = scmp.ne.s32.totalorder %s970_s19, %s966_s18 }
   0x8   : > { %p265_p1 = scmp.eq.s32.totalorder %s264_s25, 0  ;;  %p278_p2 = scmp.eq.s32.totalorder %s1064_s21, 1 }
   0x9   : > { %p283_p3 = scmp.ne.s32.totalorder %s966_s18, %s962_s17  ;;  %p284_p4 = scmp.eq.s32.totalorder %s786_s22, 1 }
   0xa   : > { %s1079_s26 = scalar_select %p265_p1, %s970_s19, %s267_s24  }
   0xb   : > { %p1081_p5 = por %p278_p2, %p277_p0  ;;  %p1085_p6 = por %p284_p4, %p283_p3 }
   0xc   : > { %p789_p7 = scmp.ge.s32.totalorder %s974_s20, 1  ;;  %p339_p8 = scmp.lt.s32.totalorder %s974_s20, 3 }
   0xe   : > { %p340_p9 = pnand %p789_p7, %p339_p8 }
   0xf   : > { %p378_p10 = scmp.lt.s32.totalorder (!%p340_p9), %s1064_s21, 1  ;;  %v383_v0 = vlaneseq (!%p340_p9)  ;;  %v976_v1 = vmov (!%p340_p9), 0.0   ;;  %s1239_s0 = sld [smem:[#allocation5_spill]] (!%p340_p9)  ;;  %vm977_vm2 = vmmov (!%p340_p9), 0   ;;  %v402_v5 = vld [vmem:[%s1226_s2] sm:$0xff] (!%p340_p9)  ;;  %v979_v6 = vmov (!%p340_p9), 0  }
  0x10   : > { %343 = sbr.rel (%p340_p9) target bundleno = 1418 (0x58a), region = 64  ;;  %827 = vmatprep.subr.bf16.mxu0 (!%p340_p9), %v976_v1  ;;  %835 = vmatprep.subr.bf16.mxu1 (!%p340_p9), %v976_v1  ;;  %s978_s15 = smov (!%p340_p9), 2   ;;  %vm428_vm6 = vcmask (!%p340_p9), 1043456   ;;  %v401_v13 = vld [vmem:[%s1225_s1] sm:$0xf] (!%p340_p9)  ;;  %vm424_vm7 = vcmask (!%p340_p9), 195584  }
  0x11   : > { %v384_v2 = vand.u32 (!%p340_p9), 127, %v383_v0  ;;  %831 = vmatprep.mubr.msk.bf16.mxu0 (!%p340_p9), %vm977_vm2, %v976_v1  ;;  %839 = vmatprep.mubr.msk.bf16.mxu1 (!%p340_p9), %vm977_vm2, %v976_v1  ;;  %s980_s24 = smov (!%p340_p9), 1   ;;  %v405_v15 = vld [vmem:[%s1229_s5] sm:$0xf] (!%p340_p9)  ;;  %vm538_vm8 = vcmask (!%p340_p9), 64512   ;;  %s981_s12 = smov (!%p340_p9), 4  }
  0x12   : > { %910 = vset.pattern.permute.xlu1 (!%p340_p9), %v979_v6  ;;  %911 = vset.pattern.permute.xlu0 (!%p340_p9), %v979_v6  ;;  %v404_v22 = vld [vmem:[%s1228_s4] sm:$0xff] (!%p340_p9) }
  0x13   : > { %vm399_vm0 = vcmp.ge.s32.totalorder (!%p340_p9), %v384_v2, 4  ;;  %vm398_vm1 = vcmp.ge.s32.totalorder (!%p340_p9), %v384_v2, 2  ;;  %421 = vperm.xlu1 (!%p340_p9), %910, %v402_v5   ;;  %vm397_vm4 = vcmp.ge.s32.totalorder (!%p340_p9), %v384_v2, 1  ;;  %v406_v23 = vld [vmem:[%s1230_s6] sm:$0xff] (!%p340_p9) }
  0x14   : > { %vm1103_vm3 = vmpackc.low (!%p340_p9), %vm398_vm1, %vm399_vm0  ;;  %v585_v24 = vld [vmem:[%s1232_s8] sm:$0xff] (!%p340_p9) }
  0x15   : > { %vm1113_vm5 = vmpackc.low (!%p340_p9), %vm397_vm4, %vm398_vm1  ;;  %v403_v30 = vld [vmem:[%s1227_s3] sm:$0xf] (!%p340_p9) }
  0x16   : > { %v584_v51 = vld [vmem:[%s1231_s7] sm:$0xf] (!%p340_p9) }
  0x17   : > { %s379_s29 = scalar_select %p378_p10, %s1064_s21, 1  ;;  %v587_v59 = vld [vmem:[%s1234_s10] sm:$0xff] }
  0x18   : > { %v586_v2 = vld [vmem:[%s1233_s9] sm:$0xf] }
  0x19   : > { %s791_s30 = sshll.u32 %s379_s29, 3  ;;  %s375_s29 = sand.u32 1, %s966_s18  }
  0x1a   : > { %s381_s14 = scalar_lea.vmem %s1239_s0, %s791_s30  ;;  %s810_s30 = sshll.u32 %s1064_s21, 7 }
  0x1b   : > { %v400_v3 = vld [vmem:[%s381_s14] sm:$0xff]  ;;  %s1182_s22 = scalar_lea.hbm %s1235_s11, %s810_s30  ;;  %s982_s21 = smov [#allocation2]  }
  0x1c   : > { %407 = vrot.lane.b32.xlu0 %v400_v3, %s978_s15  ;;  %v418_v10 = vpack.c.bf16 %v400_v3, %v400_v3 }
  0x1e   : > { %v430_v12 = vsel %vm428_vm6, %v418_v10, 0 }
  0x20   : > { %412 = vrot.lane.b32.xlu0 %v400_v3, %s980_s24 }
  0x8e   : > { %v408_v7 = vpop.permute.xlu0 %407 }
  0x92   : > { %v413_v8 = vpop.permute.xlu0 %412  ;;  %v422_v14 = vpop.permute.xlu1 %421 }
  0x93   : > { %v793_v11 = vpack.c.bf16 %v413_v8, %v408_v7 }
  0x95   : > { %828 = vmatpush3.bf16.msk.msra.mxu0 %vm1113_vm5, %v793_v11 }
  0x96   : > { %829 = vmatprep.subr.bf16.mxu0 %v976_v1 }
  0x99   : > { %830 = vmatpush3.bf16.msra.mxu0 %v430_v12 }
  0x9a   : > { %843 = vmatprep.subr.bf16.mxu0 %v976_v1 }
  0x9c   : > { %832 = vmatmul.mubr.msk.bf16.vlgmr.msra.gmra.mrb[0].mxu0 %vm424_vm7, %v401_v13 }
  0x9d   : > { %844 = vmatpush3.bf16.msra.mxu0 %v430_v12  ;;  %845 = vmatprep.mubr.msk.bf16.mxu0 %vm977_vm2, %v976_v1 }
  0x9e   : > { %857 = vmatprep.subr.bf16.mxu0 %v976_v1 }
  0xa4   : > { %846 = vmatmul.mubr.msk.bf16.vlgmr.msra.gmra.mrb[4].mxu0 %vm538_vm8, %v405_v15 }
  0xa5   : > { %861 = vmatprep.mubr.msk.bf16.mxu0 %vm977_vm2, %v976_v1 }
 0x16f   : > { %v466_v16 = vpop.f32.mrb[0].mxu0 }
 0x170   : > { %v467_v17 = vadd.f32 %v466_v16, %v422_v14  ;;  %v833_v18 = vpop.f32.mrb[1].mxu0 }
 0x171   : > { %v469_v19 = vpop.f32.mrb[2].mxu0 }
 0x172   : > { %v472_v20 = vmax.f32 %v467_v17, 0.0  ;;  %v834_v21 = vpop.f32.mrb[3].mxu0 }
 0x174   : > { %476 = vrot.lane.b32.xlu0 %v472_v20, %s980_s24  ;;  %473 = vrot.lane.b32.xlu1 %v472_v20, %s978_s15  ;;  %v480_v28 = vpack.c.bf16 %v472_v20, %v472_v20  ;;  %s790_s24 = sshll.u32 %s375_s29, 3 }
 0x176   : > { %v490_v29 = vsel %vm428_vm6, %v480_v28, 0 }
 0x177   : > { %v576_v31 = vpop.f32.mrb[4].mxu0 }
 0x178   : > { %483 = vperm.xlu1 %910, %v404_v22   ;;  %535 = vperm.xlu0 %911, %v406_v23   ;;  %v847_v32 = vpop.f32.mrb[5].mxu0 }
 0x179   : > { %v579_v33 = vpop.f32.mrb[6].mxu0 }
 0x17a   : > { %v848_v34 = vpop.f32.mrb[7].mxu0 }
 0x17c   : > { %600 = vperm.xlu0 %911, %v585_v24  }
 0x1e6   : > { %v477_v25 = vpop.permute.xlu0 %476  ;;  %v474_v26 = vpop.permute.xlu1 %473 }
 0x1e7   : > { %v797_v27 = vpack.c.bf16 %v477_v25, %v474_v26 }
 0x1e9   : > { %836 = vmatpush3.bf16.msk.msra.mxu1 %vm1113_vm5, %v797_v27 }
 0x1ea   : > { %837 = vmatprep.subr.bf16.mxu1 %v976_v1 }
 0x1ed   : > { %838 = vmatpush3.bf16.msra.mxu1 %v490_v29 }
 0x1ee   : > { %849 = vmatprep.subr.bf16.mxu1 %v976_v1 }
 0x1f0   : > { %840 = vmatmul.mubr.msk.bf16.vlgmr.msra.gmra.mrb[0].mxu1 %vm424_vm7, %v403_v30 }
 0x1f1   : > { %853 = vmatprep.mubr.msk.bf16.mxu1 %vm977_vm2, %v976_v1 }
 0x1f7   : > { %v484_v35 = vpop.permute.xlu1 %483  ;;  %v536_v36 = vpop.permute.xlu0 %535 }
 0x1f8   : > { %v577_v38 = vadd.f32 %v576_v31, %v536_v36 }
 0x1fb   : > { %v601_v52 = vpop.permute.xlu0 %600 }
 0x2c3   : > { %v526_v37 = vpop.f32.mrb[0].mxu1 }
 0x2c4   : > { %v527_v39 = vadd.f32 %v526_v37, %v484_v35  ;;  %v841_v40 = vpop.f32.mrb[1].mxu1 }
 0x2c5   : > { %v529_v41 = vpop.f32.mrb[2].mxu1 }
 0x2c6   : > { %v532_v42 = vmax.f32 %v527_v39, 0.0  ;;  %v842_v43 = vpop.f32.mrb[3].mxu1 }
 0x2c8   : > { %v582_v44 = vadd.f32 %v577_v38, %v532_v42 }
 0x2ca   : > { %v583_v45 = vmax.f32 %v582_v44, 0.0 }
 0x2cc   : > { %588 = vrot.lane.b32.xlu1 %v583_v45, %s981_s12  ;;  %v597_v49 = vpack.c.bf16 %v583_v45, %v583_v45 }
 0x2ce   : > { %v607_v50 = vsel %vm428_vm6, %v597_v49, 0 }
 0x2d0   : > { %593 = vrot.lane.b32.xlu1 %v583_v45, %s978_s15 }
 0x33e   : > { %v589_v46 = vpop.permute.xlu1 %588 }
 0x342   : > { %v594_v47 = vpop.permute.xlu1 %593 }
 0x343   : > { %v802_v48 = vpack.c.bf16 %v594_v47, %v589_v46 }
 0x345   : > { %850 = vmatpush3.bf16.msk.msra.mxu1 %vm1103_vm3, %v802_v48 }
 0x346   : > { %851 = vmatprep.subr.bf16.mxu1 %v976_v1 }
 0x349   : > { %852 = vmatpush3.bf16.msra.mxu1 %v607_v50 }
 0x34c   : > { %854 = vmatmul.mubr.msk.bf16.vlgmr.msra.gmra.mrb[4].mxu1 %vm424_vm7, %v584_v51 }
 0x41f   : > { %v643_v53 = vpop.f32.mrb[4].mxu1 }
 0x420   : > { %v644_v54 = vadd.f32 %v643_v53, %v601_v52  ;;  %v855_v55 = vpop.f32.mrb[5].mxu1 }
 0x421   : > { %v646_v56 = vpop.f32.mrb[6].mxu1 }
 0x422   : > { %v649_v57 = vmax.f32 %v644_v54, 0.0  ;;  %v856_v58 = vpop.f32.mrb[7].mxu1 }
 0x424   : > { %653 = vrot.lane.b32.xlu0 %v649_v57, %s978_s15  ;;  %650 = vrot.lane.b32.xlu1 %v649_v57, %s981_s12  ;;  %v657_v63 = vpack.c.bf16 %v649_v57, %v649_v57  ;;  %s377_s12 = scalar_lea.vmem [#allocation2], %s790_s24  ;;  %s714_s15 = scalar_lea.sflag [#allocation3], %s375_s29 }
 0x425   : > { %s727_s13 = sshll.u32 %s377_s12, 4  ;;  %s916_s24 = sshll.u32 %s982_s21, 4  ;;  %s1184_s13 = int_to_ptr.vmem [resolvable:$true] %s727_s13  ;;  %s917_s24 = int_to_ptr.vmem [resolvable:$false] %s916_s24 }
 0x426   : > { %v667_v0 = vsel %vm428_vm6, %v657_v63, 0  ;;  %s912_s25 = scalar_lea.vmem %s1184_s13, 128  ;;  %s918_s0 = scalar_lea.vmem %s917_s24, 256 }
 0x427   : > { %p913_p11 = scmp.ne.s32.totalorder %s1184_s13, %s912_s25  ;;  %p919_p0 = scmp.lt.s32.totalorder %s1184_s13, %s917_s24 }
 0x428   : > { %660 = vperm.xlu1 %910, %v587_v59   ;;  %p920_p1 = scmp.lt.s32.totalorder %s918_s0, %s912_s25 }
 0x429   : > { %p914_p12 = pnand %p913_p11, %p1081_p5 }
 0x42a   : > { %p921_p2 = por %p920_p1, %p919_p0 }
 0x42b   : > { %p915_p13 = pneg %p914_p12 }
 0x42d   : > { %p922_p3 = pnand %p921_p2, %p915_p13 }
 0x496   : > { %v654_v60 = vpop.permute.xlu0 %653  ;;  %v651_v61 = vpop.permute.xlu1 %650 }
 0x497   : > { %v806_v62 = vpack.c.bf16 %v654_v60, %v651_v61 }
 0x499   : > { %858 = vmatpush3.bf16.msk.msra.mxu0 %vm1103_vm3, %v806_v62 }
 0x49a   : > { %859 = vmatprep.subr.bf16.mxu0 %v976_v1 }
 0x49d   : > { %860 = vmatpush3.bf16.msra.mxu0 %v667_v0 }
 0x4a0   : > { %862 = vmatmul.mubr.msk.bf16.vlgmr.msra.gmra.mrb[8].mxu0 %vm424_vm7, %v586_v2 }
 0x4a7   : > { %v661_v3 = vpop.permute.xlu1 %660 }
 0x573   : > { %v703_v5 = vpop.f32.mrb[8].mxu0 }
 0x574   : > { %v704_v6 = vadd.f32 %v703_v5, %v661_v3  ;;  %v863_v4 = vpop.f32.mrb[9].mxu0 }
 0x575   : > { %v706_v7 = vpop.f32.mrb[10].mxu0 }
 0x576   : > { %v709_v8 = vmax.f32 %v704_v6, 0.0  ;;  %v864_v9 = vpop.f32.mrb[11].mxu0 }
 0x578   : > { %v710_v1 = vadd.f32 %v709_v8, %v583_v45 }
 0x57a   : > { %v711_v10 = vmax.f32 %v710_v1, 0.0 }
 0x57c   : > { %712 = vst [vmem:[%s377_s12] sm:$0xff] %v711_v10 }
 0x57d   : > { %925 = shalt.err (!%p922_p3)
}
 0x57e   : > { %s926_s29 = scalar_lea.hbm %s1182_s22, 128  ;;  %s930_s14 = scalar_lea.hbm %s1235_s11, 256 }
 0x57f   : > { %p927_p4 = scmp.ne.s32.totalorder %s1182_s22, %s926_s29  ;;  %p931_p9 = scmp.lt.u32.totalorder %s1182_s22, %s1235_s11 }
 0x580   : > { %p932_p10 = scmp.lt.u32.totalorder %s930_s14, %s926_s29  ;;  %p934_p12 = scmp.lt.u32.totalorder %s926_s29, %s1182_s22 }
 0x581   : > { %p928_p7 = pnand %p927_p4, %p1081_p5 }
 0x582   : > { %p933_p11 = por %p932_p10, %p931_p9 }
 0x583   : > { %p929_p8 = pneg %p928_p7 }
 0x584   : > { %p935_p13 = por %p934_p12, %p933_p11 }
 0x586   : > { %p936_p0 = pnand %p935_p13, %p929_p8 }
 0x588   : > { %939 = shalt.err (!%p936_p0)
}
 0x589   : > { %865 = dma.vmem_to_hbm [thread:$0]  (%p1081_p5), %s1184_s13, 128, %s1182_s22, %s714_s15  }
 0x58a PF: > { %p871_p1 = scmp.ge.s32.totalorder %s974_s20, 2  ;;  %s739_s0 = sand.u32 1, %s962_s17  }
 0x58b   : > { %s740_s25 = scalar_lea.sflag [#allocation3], %s739_s0 }
 0x58c   : > { %p868_p2 = pnand %p871_p1, %p1085_p6 }
 0x58e   : > { %957 = dma.done.wait (!%p868_p2), %s740_s25, 128  }
 0x58f   : > { %959 = vsyncadd (!%p868_p2), %s740_s25, 4294967168  ;;  %p21_p3 = scmp.ge.s32.totalorder %s1068_s23, 4   ;;  %s1244_s17 = smov %s966_s18 }
 0x590   : > { %s1245_s18 = smov %s970_s19  ;;  %s1246_s19 = smov %s1079_s26 }
 0x591   : > { %s1247_s20 = smov %s1068_s23  ;;  %23 = sbr.rel (!%p21_p3) target bundleno = 5 (0x5), region = 99 }
 0x598   :  { %745 = vsyncpa [#allocation3], 1 }
 0x599   :  { %747 = vsyncpa [#allocation3 + $0x1], 1 }

</bundles_post_ra>
